<compile_context>
chip_gen: v7x
topology: tpu7x:2x2x1
jax: 0.10.0
libtpu: 0.0.40
codegen_flags: <defaults>
</compile_context>

<pallas_src>
import jax
import jax.numpy as jnp
from jax.experimental import pallas as pl
from jax.experimental.pallas import tpu as pltpu

B = 2   # batch
N = 8   # set size
D = 16  # input_dim
H = 32  # hidden_dim

# Row layout of the packed weight slab (every block starts on an 8-row tile).
_W1_OFF = 0            # (D, H)  phi layer 1
_W2_OFF = D            # (H, H)  phi layer 2
_R1M_OFF = D + H       # (H, H)  rho layer 1, rows acting on `mean`
_R1S_OFF = D + 2 * H   # (H, H)  rho layer 1, rows acting on `std`
_R2_OFF = D + 3 * H    # (H, H)  rho layer 2
_W_ROWS = D + 4 * H    # 144 rows total


def _elu(z):
    # ELU(alpha=1): z if z > 0 else exp(z) - 1 (clamp exp arg for safety).
    return jnp.where(z > 0, z, jnp.exp(jnp.minimum(z, 0.0)) - 1.0)


def deepset_kernel(x_ref, w_ref, b_ref, o_ref):
    # x_ref: (B, N, D)   w_ref: (_W_ROWS, H)   b_ref: (4, H)   o_ref: (B, H)
    x = x_ref[...].reshape(B * N, D)            # fold batch*set into the M dim

    w = w_ref[...]                              # single load, static slices below
    w1 = w[_W1_OFF:_W1_OFF + D]
    w2 = w[_W2_OFF:_W2_OFF + H]
    r1m = w[_R1M_OFF:_R1M_OFF + H]
    r1s = w[_R1S_OFF:_R1S_OFF + H]
    r2 = w[_R2_OFF:_R2_OFF + H]
    b1 = b_ref[0:1]
    b2 = b_ref[1:2]
    rb1 = b_ref[2:3]
    rb2 = b_ref[3:4]

    # ---- phi_net: Linear + ReLU, Linear + ReLU on the (B*N, .) slab ----
    h = jnp.dot(x, w1, preferred_element_type=jnp.float32) + b1
    h = jnp.maximum(h, 0.0)
    h = jnp.dot(h, w2, preferred_element_type=jnp.float32) + b2
    h = jnp.maximum(h, 0.0)                     # (B*N, H)

    # ---- set pooling: one-pass mean / unbiased-std over the set dim ----
    h3 = h.reshape(B, N, H)
    s = jnp.sum(h3, axis=1)                     # (B, H)
    sq = jnp.sum(h3 * h3, axis=1)               # (B, H)
    mean = s * (1.0 / N)
    var = jnp.maximum((sq - s * s * (1.0 / N)) * (1.0 / (N - 1)), 0.0)
    std = jnp.sqrt(var + 1e-8)                  # (B, H)

    # ---- rho_net: Linear + ELU, Linear + ELU (concat replaced by split W) --
    r = (jnp.dot(mean, r1m, preferred_element_type=jnp.float32)
         + jnp.dot(std, r1s, preferred_element_type=jnp.float32) + rb1)
    r = _elu(r)
    r = jnp.dot(r, r2, preferred_element_type=jnp.float32) + rb2
    r = _elu(r)                                 # (B, H)

    o_ref[...] = r.astype(o_ref.dtype)


def pack_params(params):
    """Pack the 8 Linear params into one weight slab and one bias slab."""
    w1, b1, w2, b2, r1, rb1, r2, rb2 = params
    # rho layer-1 weight (2H, H) split so the kernel never concatenates lanes.
    w_slab = jnp.concatenate([w1, w2, r1[:H], r1[H:], r2], axis=0)  # (144, H)
    b_slab = jnp.concatenate([b1, b2, rb1, rb2], axis=0)            # (4, H)
    return w_slab, b_slab


def deepset_encoder(x, params):
    """x: (B, N, D) float32 -> (B, H) float32."""
    w_slab, b_slab = pack_params(params)
    return pl.pallas_call(
        deepset_kernel,
        out_shape=jax.ShapeDtypeStruct((B, H), jnp.float32),
        grid_spec=pltpu.PrefetchScalarGridSpec(
            num_scalar_prefetch=0,
            grid=(1,),                                  # single step: whole problem
            in_specs=[
                pl.BlockSpec((B, N, D), lambda i: (0, 0, 0)),
                pl.BlockSpec((_W_ROWS, H), lambda i: (0, 0)),
                pl.BlockSpec((4, H), lambda i: (0, 0)),
            ],
            out_specs=pl.BlockSpec((B, H), lambda i: (0, 0)),
        ),
        compiler_params=pltpu.CompilerParams(
            dimension_semantics=("arbitrary",)),
    )(x, w_slab, b_slab)


def _ref_forward(x, params):
    # Pure-JAX reference with the original (two-pass, unbiased-var) semantics.
    w1, b1, w2, b2, r1, rb1, r2, rb2 = params
    h = jnp.maximum(x @ w1 + b1, 0.0)
    h = jnp.maximum(h @ w2 + b2, 0.0)
    mean = h.mean(axis=1, keepdims=True)
    var = jnp.sum((h - mean) ** 2, axis=1, keepdims=True) / (N - 1)
    std = jnp.sqrt(var + 1e-8)
    z = jnp.concatenate([mean, std], axis=2)
    r = z @ r1 + rb1
    r = jnp.where(r > 0, r, jnp.exp(jnp.minimum(r, 0.0)) - 1.0)
    r = r @ r2 + rb2
    r = jnp.where(r > 0, r, jnp.exp(jnp.minimum(r, 0.0)) - 1.0)
    return r[:, 0, :]


def _init_params(key):
    ks = jax.random.split(key, 8)
    def lin(kw, fan_in, fan_out):
        bound = 1.0 / jnp.sqrt(fan_in)
        w = jax.random.uniform(kw, (fan_in, fan_out), jnp.float32, -bound, bound)
        kb = jax.random.fold_in(kw, 1)
        b = jax.random.uniform(kb, (1, fan_out), jnp.float32, -bound, bound)
        return w, b
    w1, b1 = lin(ks[0], D, H)
    w2, b2 = lin(ks[1], H, H)
    r1, rb1 = lin(ks[2], 2 * H, H)
    r2, rb2 = lin(ks[3], H, H)
    return (w1, b1, w2, b2, r1, rb1, r2, rb2)


if __name__ == "__main__":
    key = jax.random.PRNGKey(0)
    kx, kp = jax.random.split(key)
    x = jax.random.normal(kx, (B, N, D), dtype=jnp.float32)
    params = _init_params(kp)

    out = deepset_encoder(x, params)
    out = jax.block_until_ready(out)

    ref = _ref_forward(x, params)
    assert out.shape == (B, H), out.shape
    assert jnp.allclose(out, ref, atol=1e-5, rtol=1e-5), "mismatch vs reference"
    print("KERNEL_OK")
</pallas_src>

<mosaic_0001>
module attributes {stable_mosaic.version = 11 : i64} {
  func.func @deepset_kernel(%arg0: i32, %arg1: memref<2x8x16xf32, #tpu.memory_space<vmem>>, %arg2: memref<144x32xf32, #tpu.memory_space<vmem>>, %arg3: memref<4x32xf32, #tpu.memory_space<vmem>>, %arg4: memref<2x32xf32, #tpu.memory_space<vmem>>) attributes {dimension_semantics = [#tpu.dimension_semantics<arbitrary>], iteration_bounds = array<i64: 1>, scalar_prefetch = 0 : i64, scratch_operands = 0 : i64, tpu.core_type = #tpu.core_type<tc>, window_params = [{pipeline_mode = #tpu.pipeline_mode<synchronous>, transform_indices = @transform_0, window_bounds = array<i64: 2, 8, 16>}, {pipeline_mode = #tpu.pipeline_mode<synchronous>, transform_indices = @transform_1, window_bounds = array<i64: 144, 32>}, {pipeline_mode = #tpu.pipeline_mode<synchronous>, transform_indices = @transform_2, window_bounds = array<i64: 4, 32>}, {pipeline_mode = #tpu.pipeline_mode<synchronous>, transform_indices = @transform_3, window_bounds = array<i64: 2, 32>}]} {
    %c0 = arith.constant 0 : index
    %c0_0 = arith.constant 0 : index
    %c0_1 = arith.constant 0 : index
    %0 = vector.load %arg1[%c0, %c0_0, %c0_1] : memref<2x8x16xf32, #tpu.memory_space<vmem>>, vector<2x8x16xf32>
    %1 = vector.shape_cast %0 : vector<2x8x16xf32> to vector<16x16xf32>
    %c0_2 = arith.constant 0 : index
    %c0_3 = arith.constant 0 : index
    %2 = vector.load %arg2[%c0_2, %c0_3] : memref<144x32xf32, #tpu.memory_space<vmem>>, vector<144x32xf32>
    %3 = vector.extract_strided_slice %2 {offsets = [0, 0], sizes = [16, 32], strides = [1, 1]} : vector<144x32xf32> to vector<16x32xf32>
    %4 = vector.extract_strided_slice %2 {offsets = [16, 0], sizes = [32, 32], strides = [1, 1]} : vector<144x32xf32> to vector<32x32xf32>
    %5 = vector.extract_strided_slice %2 {offsets = [48, 0], sizes = [32, 32], strides = [1, 1]} : vector<144x32xf32> to vector<32x32xf32>
    %6 = vector.extract_strided_slice %2 {offsets = [80, 0], sizes = [32, 32], strides = [1, 1]} : vector<144x32xf32> to vector<32x32xf32>
    %7 = vector.extract_strided_slice %2 {offsets = [112, 0], sizes = [32, 32], strides = [1, 1]} : vector<144x32xf32> to vector<32x32xf32>
    %c0_4 = arith.constant 0 : index
    %c0_5 = arith.constant 0 : index
    %8 = vector.load %arg3[%c0_4, %c0_5] : memref<4x32xf32, #tpu.memory_space<vmem>>, vector<1x32xf32>
    %c1 = arith.constant 1 : index
    %c0_6 = arith.constant 0 : index
    %9 = vector.load %arg3[%c1, %c0_6] : memref<4x32xf32, #tpu.memory_space<vmem>>, vector<1x32xf32>
    %c2 = arith.constant 2 : index
    %c0_7 = arith.constant 0 : index
    %10 = vector.load %arg3[%c2, %c0_7] : memref<4x32xf32, #tpu.memory_space<vmem>>, vector<1x32xf32>
    %c3 = arith.constant 3 : index
    %c0_8 = arith.constant 0 : index
    %11 = vector.load %arg3[%c3, %c0_8] : memref<4x32xf32, #tpu.memory_space<vmem>>, vector<1x32xf32>
    %cst = arith.constant dense<0.000000e+00> : vector<16x32xf32>
    %12 = tpu.matmul %1, %3, %cst {dimension_numbers = #tpu.dot_dimension_numbers<[1], [0], [0], [1], [0, 0, 1, 1], [], []>} : vector<16x16xf32>, vector<16x32xf32>, vector<16x32xf32> -> vector<16x32xf32>
    %13 = vector.broadcast %8 : vector<1x32xf32> to vector<16x32xf32>
    %14 = arith.addf %12, %13 : vector<16x32xf32>
    %cst_9 = arith.constant 0.000000e+00 : f32
    %15 = vector.broadcast %cst_9 : f32 to vector<16x32xf32>
    %16 = arith.maximumf %14, %15 : vector<16x32xf32>
    %cst_10 = arith.constant dense<0.000000e+00> : vector<16x32xf32>
    %17 = tpu.matmul %16, %4, %cst_10 {dimension_numbers = #tpu.dot_dimension_numbers<[1], [0], [0], [1], [0, 0, 1, 1], [], []>} : vector<16x32xf32>, vector<32x32xf32>, vector<16x32xf32> -> vector<16x32xf32>
    %18 = vector.broadcast %9 : vector<1x32xf32> to vector<16x32xf32>
    %19 = arith.addf %17, %18 : vector<16x32xf32>
    %cst_11 = arith.constant 0.000000e+00 : f32
    %20 = vector.broadcast %cst_11 : f32 to vector<16x32xf32>
    %21 = arith.maximumf %19, %20 : vector<16x32xf32>
    %22 = vector.shape_cast %21 : vector<16x32xf32> to vector<2x8x32xf32>
    %cst_12 = arith.constant dense<0.000000e+00> : vector<2x32xf32>
    %23 = vector.multi_reduction <add>, %22, %cst_12 [1] : vector<2x8x32xf32> to vector<2x32xf32>
    %24 = arith.mulf %22, %22 : vector<2x8x32xf32>
    %cst_13 = arith.constant dense<0.000000e+00> : vector<2x32xf32>
    %25 = vector.multi_reduction <add>, %24, %cst_13 [1] : vector<2x8x32xf32> to vector<2x32xf32>
    %cst_14 = arith.constant 1.250000e-01 : f32
    %26 = vector.broadcast %cst_14 : f32 to vector<2x32xf32>
    %27 = arith.mulf %23, %26 : vector<2x32xf32>
    %28 = arith.mulf %23, %23 : vector<2x32xf32>
    %cst_15 = arith.constant 1.250000e-01 : f32
    %29 = vector.broadcast %cst_15 : f32 to vector<2x32xf32>
    %30 = arith.mulf %28, %29 : vector<2x32xf32>
    %31 = arith.subf %25, %30 : vector<2x32xf32>
    %cst_16 = arith.constant 0.142857149 : f32
    %32 = vector.broadcast %cst_16 : f32 to vector<2x32xf32>
    %33 = arith.mulf %31, %32 : vector<2x32xf32>
    %cst_17 = arith.constant 0.000000e+00 : f32
    %34 = vector.broadcast %cst_17 : f32 to vector<2x32xf32>
    %35 = arith.maximumf %33, %34 : vector<2x32xf32>
    %cst_18 = arith.constant 9.99999993E-9 : f32
    %36 = vector.broadcast %cst_18 : f32 to vector<2x32xf32>
    %37 = arith.addf %35, %36 : vector<2x32xf32>
    %38 = math.sqrt %37 : vector<2x32xf32>
    %cst_19 = arith.constant dense<0.000000e+00> : vector<2x32xf32>
    %39 = tpu.matmul %27, %5, %cst_19 {dimension_numbers = #tpu.dot_dimension_numbers<[1], [0], [0], [1], [0, 0, 1, 1], [], []>} : vector<2x32xf32>, vector<32x32xf32>, vector<2x32xf32> -> vector<2x32xf32>
    %cst_20 = arith.constant dense<0.000000e+00> : vector<2x32xf32>
    %40 = tpu.matmul %38, %6, %cst_20 {dimension_numbers = #tpu.dot_dimension_numbers<[1], [0], [0], [1], [0, 0, 1, 1], [], []>} : vector<2x32xf32>, vector<32x32xf32>, vector<2x32xf32> -> vector<2x32xf32>
    %41 = arith.addf %39, %40 : vector<2x32xf32>
    %42 = vector.broadcast %10 : vector<1x32xf32> to vector<2x32xf32>
    %43 = arith.addf %41, %42 : vector<2x32xf32>
    %cst_21 = arith.constant 0.000000e+00 : f32
    %44 = vector.broadcast %cst_21 : f32 to vector<2x32xf32>
    %45 = arith.cmpf ogt, %43, %44 : vector<2x32xf32>
    %cst_22 = arith.constant 0.000000e+00 : f32
    %46 = vector.broadcast %cst_22 : f32 to vector<2x32xf32>
    %47 = arith.minimumf %43, %46 : vector<2x32xf32>
    %48 = math.exp %47 : vector<2x32xf32>
    %cst_23 = arith.constant 1.000000e+00 : f32
    %49 = vector.broadcast %cst_23 : f32 to vector<2x32xf32>
    %50 = arith.subf %48, %49 : vector<2x32xf32>
    %51 = arith.select %45, %43, %50 : vector<2x32xi1>, vector<2x32xf32>
    %cst_24 = arith.constant dense<0.000000e+00> : vector<2x32xf32>
    %52 = tpu.matmul %51, %7, %cst_24 {dimension_numbers = #tpu.dot_dimension_numbers<[1], [0], [0], [1], [0, 0, 1, 1], [], []>} : vector<2x32xf32>, vector<32x32xf32>, vector<2x32xf32> -> vector<2x32xf32>
    %53 = vector.broadcast %11 : vector<1x32xf32> to vector<2x32xf32>
    %54 = arith.addf %52, %53 : vector<2x32xf32>
    %cst_25 = arith.constant 0.000000e+00 : f32
    %55 = vector.broadcast %cst_25 : f32 to vector<2x32xf32>
    %56 = arith.cmpf ogt, %54, %55 : vector<2x32xf32>
    %cst_26 = arith.constant 0.000000e+00 : f32
    %57 = vector.broadcast %cst_26 : f32 to vector<2x32xf32>
    %58 = arith.minimumf %54, %57 : vector<2x32xf32>
    %59 = math.exp %58 : vector<2x32xf32>
    %cst_27 = arith.constant 1.000000e+00 : f32
    %60 = vector.broadcast %cst_27 : f32 to vector<2x32xf32>
    %61 = arith.subf %59, %60 : vector<2x32xf32>
    %62 = arith.select %56, %54, %61 : vector<2x32xi1>, vector<2x32xf32>
    %c0_28 = arith.constant 0 : index
    %c0_29 = arith.constant 0 : index
    %63 = vector.load %arg4[%c0_28, %c0_29] : memref<2x32xf32, #tpu.memory_space<vmem>>, vector<2x32xf32>
    tpu.vector_store %arg4[%c0_28, %c0_29], %62 {strides = array<i32>} : memref<2x32xf32, #tpu.memory_space<vmem>>, vector<2x32xf32>,
    return
  }
  func.func @transform_0(%arg0: i32) -> (i32, i32, i32) {
    %c0_i32 = arith.constant 0 : i32
    %c0_i32_0 = arith.constant 0 : i32
    %c0_i32_1 = arith.constant 0 : i32
    %c0_i32_2 = arith.constant 0 : i32
    return %c0_i32, %c0_i32_0, %c0_i32_1 : i32, i32, i32
  }
  func.func @transform_1(%arg0: i32) -> (i32, i32) {
    %c0_i32 = arith.constant 0 : i32
    %c0_i32_0 = arith.constant 0 : i32
    %c0_i32_1 = arith.constant 0 : i32
    return %c0_i32, %c0_i32_0 : i32, i32
  }
  func.func @transform_2(%arg0: i32) -> (i32, i32) {
    %c0_i32 = arith.constant 0 : i32
    %c0_i32_0 = arith.constant 0 : i32
    %c0_i32_1 = arith.constant 0 : i32
    return %c0_i32, %c0_i32_0 : i32, i32
  }
  func.func @transform_3(%arg0: i32) -> (i32, i32) {
    %c0_i32 = arith.constant 0 : i32
    %c0_i32_0 = arith.constant 0 : i32
    %c0_i32_1 = arith.constant 0 : i32
    return %c0_i32, %c0_i32_0 : i32, i32
  }
}

</mosaic_0001>

<bundles_post_ra>
// kernel: tpu_custom_call.1
= control target key start
LH: loop header
LB: loop body
LE: loop exit
PB: predicated region body
PF: predicated region fallthrough
CT: control target
= control target key end

     0   :  { %vm43_vm0 = vcmask 130048   ;;  %s820_s0 = inlined_call_operand.vmem [shape: f32[2,8,16], index: 0, kind: input, shape index: {}]   ;;  %s821_s1 = inlined_call_operand.vmem [shape: f32[144,32], index: 1, kind: input, shape index: {}]   ;;  %s822_s2 = inlined_call_operand.vmem [shape: f32[4,32], index: 2, kind: input, shape index: {}]   ;;  %s823_s3 = inlined_call_operand.hbm [shape: f32[2,32], index: 3, kind: output, shape index: {}]  }
   0x1   :  { %v17_v0 = vld [vmem:[%s821_s1] sm:$0xff]  ;;  %v18_v1 = vld [vmem:[%s821_s1 + $0x8] sm:$0xff]  ;;  %v19_v4 = vld [vmem:[%s821_s1 + $0x10] sm:$0xff] }
   0x2   :  { %v15_v2 = vld [vmem:[%s820_s0] sm:$0xff]  ;;  %v623_v3 = vpack.c.bf16 %v18_v1, %v17_v0  ;;  %v20_v5 = vld [vmem:[%s821_s1 + $0x18] sm:$0xff] }
   0x3   :  { %576 = vmatprep.mubr.msk.f32.mxu0 %vm43_vm0, %v15_v2  ;;  %v627_v6 = vpack.c.bf16 %v20_v5, %v19_v4 }
   0x4   :  { %8 = vsyncpa [#allocation3], 0  ;;  %624 = vmatprep.subr.bf16.mxu0 %v623_v3  ;;  %v16_v7 = vld [vmem:[%s820_s0 + $0x8] sm:$0xff]  ;;  %v21_v8 = vld [vmem:[%s821_s1 + $0x20] sm:$0xff]  ;;  %vm131_vm1 = vcmask 261120   ;;  %v689_v21 = vmov 0.0|0.0  }
   0x5   :  { %626 = vmatpush3.bf16.msra.mxu0 %v623_v3  ;;  %628 = vmatprep.subr.bf16.mxu1 %v627_v6  ;;  %v22_v9 = vld [vmem:[%s821_s1 + $0x28] sm:$0xff]  ;;  %v534_v11 = vld [vmem:[%s822_s2] ss:$0 sm:$0xff]  ;;  %v23_v18 = vld [vmem:[%s821_s1 + $0x30] sm:$0xff]  ;;  %vm690_vm2 = vmmov 0   ;;  %v691_v25 = vmov 0.0  }
   0x6   :  { %630 = vmatpush3.bf16.msra.mxu1 %v627_v6  ;;  %v631_v10 = vpack.c.bf16 %v22_v9, %v21_v8  ;;  %v24_v19 = vld [vmem:[%s821_s1 + $0x38] sm:$0xff]  ;;  %635 = vmatprep.subr.bf16.mxu0 %v689_v21  ;;  %v25_v22 = vld [vmem:[%s821_s1 + $0x40] sm:$0xff]  ;;  %v26_v23 = vld [vmem:[%s821_s1 + $0x48] sm:$0xff]  ;;  %vm275_vm3 = vcmask 1041409   ;;  %s692_s30 = smov [#allocation2]   ;;  %vm518_vm9 = vcmask 254976  }
   0x7   :  { %v642_v20 = vpack.c.bf16 %v24_v19, %v23_v18  ;;  %v645_v24 = vpack.c.bf16 %v26_v23, %v25_v22  ;;  %v27_v26 = vld [vmem:[%s821_s1 + $0x50] sm:$0xff]  ;;  %v28_v27 = vld [vmem:[%s821_s1 + $0x58] sm:$0xff]  ;;  %v29_v28 = vld [vmem:[%s821_s1 + $0x60] sm:$0xff]  ;;  %s526_s4 = sshll.u32 %s692_s30, 4  ;;  %s527_s4 = int_to_ptr.vmem [resolvable:$true] %s526_s4 }
   0x8   :  { %577 = vmatmul.mubr.msk.f32.vlgmr.msra.gmra.mrb[0].mxu0 %vm43_vm0, %v16_v7  ;;  %632 = vmatprep.subr.bf16.mxu1 %v631_v10  ;;  %v636_v29 = vpack.c.bf16 %v28_v27, %v27_v26  ;;  %v30_v30 = vld [vmem:[%s821_s1 + $0x68] sm:$0xff]  ;;  %v537_v32 = vld [vmem:[%s822_s2 + $0x1] ss:$0 sm:$0xff]  ;;  %s665_s5 = scalar_lea.vmem %s527_s4, 32  ;;  %p670_p1 = scmp.lt.s32.totalorder %s527_s4, %s527_s4 }
   0x9   :  { %598 = vmatprep.mubr.msk.f32.mxu0 %vm690_vm2, %v691_v25  ;;  %v639_v31 = vpack.c.bf16 %v30_v30, %v29_v28  ;;  %p666_p0 = scmp.ne.s32.totalorder %s527_s4, %s665_s5  ;;  %p671_p2 = scmp.lt.s32.totalorder %s665_s5, %s665_s5 }
   0xa   :  { %634 = vmatpush3.bf16.msra.mxu1 %v631_v10  ;;  %637 = vmatpush3.bf16.msra.mxu0 %v636_v29 }
   0xb   :  { %641 = vmatprep.subr.bf16.mxu1 %v689_v21  ;;  %638 = vmatprep.subr.bf16.mxu0 %v689_v21  ;;  %p672_p3 = por %p671_p2, %p670_p1 }
   0xd   :  { %p673_p4 = pnand %p672_p3, %p666_p0 }
   0xe   :  { %640 = vmatpush3.bf16.msra.mxu0 %v639_v31 }
   0xf   :  { %647 = vmatprep.subr.bf16.mxu0 %v689_v21 }
  0xdb   :  { %v578_v12 = vpop.f32.mrb[0].mxu0 }
  0xdc   :  { %v122_v13 = vadd.f32 %v578_v12, %v534_v11  ;;  %v116_v14 = vpop.f32.mrb[1].mxu0 }
  0xdd   :  { %v117_v15 = vadd.f32 %v534_v11, %v116_v14 }
  0xde   :  { %v126_v17 = vmax.f32 %v122_v13, 0.0 }
  0xdf   :  { %v125_v16 = vmax.f32 %v117_v15, 0.0 }
  0xe1   :  { %587 = vmatprep.mubr.msk.f32.mxu1 %vm131_vm1, %v125_v16 }
  0xe2   :  { %588 = vmatmul.mubr.msk.f32.vlgmr.msra.gmra.mrb[0].mxu1 %vm131_vm1, %v126_v17 }
  0xe3   :  { %643 = vmatpush3.bf16.msra.mxu1 %v642_v20  ;;  %609 = vmatprep.mubr.msk.f32.mxu1 %vm690_vm2, %v691_v25 }
  0xe4   :  { %644 = vmatprep.subr.bf16.mxu1 %v689_v21 }
  0xe7   :  { %646 = vmatpush3.bf16.msra.mxu1 %v645_v24 }
 0x1b5   :  { %v589_v33 = vpop.f32.mrb[0].mxu1 }
 0x1b6   :  { %v210_v34 = vadd.f32 %v589_v33, %v537_v32  ;;  %v204_v35 = vpop.f32.mrb[1].mxu1  ;;  %v31_v33 = vld [vmem:[%s821_s1 + $0x70] sm:$0xff] }
 0x1b7   :  { %v205_v36 = vadd.f32 %v537_v32, %v204_v35  ;;  %v33_v35 = vld [vmem:[%s821_s1 + $0x80] sm:$0xff] }
 0x1b8   :  { %v214_v37 = vmax.f32 %v210_v34, 0.0  ;;  %v32_v34 = vld [vmem:[%s821_s1 + $0x78] sm:$0xff] }
 0x1b9   :  { %v213_v38 = vmax.f32 %v205_v36, 0.0  ;;  %v648_v36 = vpack.c.bf16 %v32_v34, %v31_v33 }
 0x1ba   :  { %v222_v39 = vsel %vm131_vm1, %v214_v37, 0.0  ;;  %v230_v40 = vmul.f32 %v214_v37, %v214_v37  ;;  %v34_v37 = vld [vmem:[%s821_s1 + $0x88] sm:$0xff] }
 0x1bb   :  { %v223_v41 = vrot.slane %v222_v39, 4  ;;  %v215_v42 = vsel %vm131_vm1, %v213_v38, 0.0  ;;  %v229_v43 = vmul.f32 %v213_v38, %v213_v38  ;;  %v651_v38 = vpack.c.bf16 %v34_v37, %v33_v35 }
 0x1bc   :  { %v238_v44 = vsel %vm131_vm1, %v230_v40, 0.0  ;;  %v216_v45 = vrot.slane %v215_v42, 4  ;;  %v542_v40 = vld [vmem:[%s822_s2 + $0x2] ss:$0 sm:$0xff] }
 0x1bd   :  { %v224_v46 = vadd.f32 %v223_v41, %v222_v39  ;;  %v239_v47 = vrot.slane %v238_v44, 4  ;;  %v231_v48 = vsel %vm131_vm1, %v229_v43, 0.0 }
 0x1be   :  { %v217_v49 = vadd.f32 %v216_v45, %v215_v42  ;;  %v232_v50 = vrot.slane %v231_v48, 4 }
 0x1bf   :  { %v225_v51 = vrot.slane %v224_v46, 2  ;;  %v240_v52 = vadd.f32 %v239_v47, %v238_v44 }
 0x1c0   :  { %v218_v53 = vrot.slane %v217_v49, 2  ;;  %v233_v54 = vadd.f32 %v232_v50, %v231_v48 }
 0x1c1   :  { %v226_v55 = vadd.f32 %v225_v51, %v224_v46  ;;  %v241_v56 = vrot.slane %v240_v52, 2 }
 0x1c2   :  { %v219_v57 = vadd.f32 %v218_v53, %v217_v49  ;;  %v234_v58 = vrot.slane %v233_v54, 2 }
 0x1c3   :  { %v227_v59 = vrot.slane %v226_v55, 1  ;;  %v242_v60 = vadd.f32 %v241_v56, %v240_v52 }
 0x1c4   :  { %v220_v61 = vrot.slane %v219_v57, 1  ;;  %v235_v62 = vadd.f32 %v234_v58, %v233_v54 }
 0x1c5   :  { %v228_v63 = vadd.f32 %v227_v59, %v226_v55  ;;  %v243_v0 = vrot.slane %v242_v60, 1 }
 0x1c6   :  { %v221_v1 = vadd.f32 %v220_v61, %v219_v57  ;;  %v236_v2 = vrot.slane %v235_v62, 1 }
 0x1c7   :  { %v246_v3 = vmul.f32 0.125, %v228_v63  ;;  %v248_v4 = vmul.f32 %v228_v63, %v228_v63  ;;  %v244_v7 = vadd.f32 %v243_v0, %v242_v60 }
 0x1c8   :  { %v245_v5 = vmul.f32 0.125, %v221_v1  ;;  %v247_v6 = vmul.f32 %v221_v1, %v221_v1  ;;  %v237_v9 = vadd.f32 %v236_v2, %v235_v62 }
 0x1c9   :  { %v250_v8 = vmul.f32 0.125, %v248_v4 }
 0x1ca   :  { %v249_v10 = vmul.f32 0.125, %v247_v6  ;;  %v351_v11 = vsel %vm275_vm3, %v246_v3, %v245_v5 }
 0x1cb   :  { %v252_v12 = vsub.f32 %v244_v7, %v250_v8  ;;  %610 = vmatmul.mubr.msk.f32.vlgmr.msra.gmra.mrb[2].mxu1 %vm131_vm1, %v351_v11 }
 0x1cc   :  { %v251_v13 = vsub.f32 %v237_v9, %v249_v10 }
 0x1cd   :  { %v254_v14 = vmul.f32 0.14285715, %v252_v12 }
 0x1ce   :  { %v253_v15 = vmul.f32 0.14285715, %v251_v13 }
 0x1cf   :  { %v256_v16 = vmax.f32 %v254_v14, 0.0 }
 0x1d0   :  { %v255_v17 = vmax.f32 %v253_v15, 0.0 }
 0x1d1   :  { %v258_v18 = vadd.f32 1e-08, %v256_v16 }
 0x1d2   :  { %v257_v19 = vadd.f32 1e-08, %v255_v17 }
 0x1d3   :  { %657 = vrsqrt.f32 %v258_v18  ;;  %vm268_vm4 = vcmp.eq.f32.partialorder %v258_v18, inf  ;;  %v271_v26 = vand.u32 2147483648, %v258_v18  ;;  %vm270_vm6 = vcmp.eq.f32.partialorder %v258_v18, 0.0 }
 0x1d4   :  { %659 = vrsqrt.f32 %v257_v19  ;;  %vm261_vm5 = vcmp.eq.f32.partialorder %v257_v19, inf  ;;  %v264_v27 = vand.u32 2147483648, %v257_v19  ;;  %vm263_vm7 = vcmp.eq.f32.partialorder %v257_v19, 0.0 }
 0x1dd   :  { %v658_v20 = vpop.eup %657 }
 0x1de   :  { %v660_v22 = vpop.eup %659  ;;  %v267_v23 = vmul.f32 %v658_v20, %v258_v18 }
 0x1df   :  { %v260_v24 = vmul.f32 %v660_v22, %v257_v19 }
 0x1e0   :  { %v269_v28 = vsel %vm268_vm4, %v258_v18, %v267_v23 }
 0x1e1   :  { %v262_v29 = vsel %vm261_vm5, %v257_v19, %v260_v24  ;;  %v272_v30 = vsel %vm270_vm6, %v271_v26, %v269_v28 }
 0x1e2   :  { %v265_v31 = vsel %vm263_vm7, %v264_v27, %v262_v29 }
 0x1e3   :  { %v276_v32 = vsel %vm275_vm3, %v272_v30, %v265_v31 }
 0x1e4   :  { %599 = vmatmul.mubr.msk.f32.vlgmr.msra.gmra.mrb[2].mxu0 %vm131_vm1, %v276_v32 }
 0x1e5   :  { %620 = vmatprep.mubr.msk.f32.mxu0 %vm690_vm2, %v691_v25  ;;  %649 = vmatpush3.bf16.msra.mxu0 %v648_v36 }
 0x1e6   :  { %650 = vmatprep.subr.bf16.mxu0 %v689_v21  ;;  %v544_v21 = vld [vmem:[%s822_s2 + $0x3] ss:$0 sm:$0xff] }
 0x1e9   :  { %652 = vmatpush3.bf16.msra.mxu0 %v651_v38 }
 0x29e   :  { %v420_v25 = vpop.f32.mrb[2].mxu1 }
 0x29f   :  { %v611_v39 = vpop.f32.mrb[3].mxu1 }
 0x2b7   :  { %v345_v41 = vpop.f32.mrb[2].mxu0 }
 0x2b8   :  { %v421_v42 = vadd.f32 %v420_v25, %v345_v41  ;;  %v600_v43 = vpop.f32.mrb[3].mxu0 }
 0x2ba   :  { %v428_v44 = vadd.f32 %v542_v40, %v421_v42 }
 0x2bc   :  { %v430_v45 = vmin.f32 %v428_v44, 0.0  ;;  %vm429_vm8 = vcmp.gt.f32.partialorder %v428_v44, 0.0 }
 0x2be   :  { %v431_v46 = vmul.f32 1.442695, %v430_v45 }
 0x2c0   :  { %661 = vpow2.f32 %v431_v46 }
 0x2ca   :  { %v662_v47 = vpop.eup %661 }
 0x2cb   :  { %v543_v48 = vadd.f32 -1.0, %v662_v47 }
 0x2cd   :  { %v434_v49 = vsel %vm429_vm8, %v428_v44, %v543_v48 }
 0x2ce   :  { %621 = vmatmul.mubr.msk.f32.vlgmr.msra.gmra.mrb[4].mxu0 %vm131_vm1, %v434_v49 }
 0x3a1   :  { %v508_v50 = vpop.f32.mrb[4].mxu0 }
 0x3a2   :  { %v509_v51 = vadd.f32 %v544_v21, %v508_v50  ;;  %v622_v52 = vpop.f32.mrb[5].mxu0 }
 0x3a4   :  { %v513_v53 = vmin.f32 %v509_v51, 0.0  ;;  %vm512_vm10 = vcmp.gt.f32.partialorder %v509_v51, 0.0 }
 0x3a6   :  { %v514_v54 = vmul.f32 1.442695, %v513_v53 }
 0x3a8   :  { %663 = vpow2.f32 %v514_v54 }
 0x3b2   :  { %v664_v55 = vpop.eup %663 }
 0x3b3   :  { %v546_v56 = vadd.f32 -1.0, %v664_v55 }
 0x3b5   :  { %v517_v57 = vsel %vm512_vm10, %v509_v51, %v546_v56 }
 0x3b6   :  { %519 = vst.msk [vmem:[#allocation2] sm:$0x3] %vm518_vm9, %v517_v57 }
 0x3b7   :  { %676 = shalt.err (!%p673_p4)
}
 0x3b8   :  { %s677_s7 = scalar_lea.hbm %s823_s3, 32 }
 0x3b9   :  { %p678_p5 = scmp.ne.s32.totalorder %s823_s3, %s677_s7  ;;  %p681_p6 = scmp.lt.u32.totalorder %s677_s7, %s823_s3 }
 0x3bb   :  { %p683_p7 = pnand %p681_p6, %p678_p5 }
 0x3bd   :  { %686 = shalt.err (!%p683_p7)
}
 0x3be   :  { %529 = dma.vmem_to_hbm [thread:$0]  %s527_s4, 32, %s823_s3, [#allocation3]  }
 0x3bf   :  { %687 = dma.done.wait [#allocation3], 32  }
 0x3c0   :  { %688 = vsyncadd [#allocation3], 4294967264 }
 0x3c1   :  { %533 = vsyncpa [#allocation3], 1 }

</bundles_post_ra>
